<compile_context>
chip_gen: v7x
topology: tpu7x:2x2x1
jax: 0.10.0
libtpu: 0.0.40
codegen_flags: <defaults>
</compile_context>

<pallas_src>
import jax
import jax.numpy as jnp
from jax.experimental import pallas as pl
from jax.experimental.pallas import tpu as pltpu


def _round_up(x, m):
    return (x + m - 1) // m * m


def dhaspi_kernel(x_ref, w1_ref, b1_ref, w2_ref, b2_ref, w3_ref, b3_ref,
                  w4_ref, b4_ref, o_ref):
    """Fused MLP forward for one batch tile (batch on the lane axis).

    x_ref : [10, TB]   (VMEM)   transposed features
    w1    : [128, 10]  b1: [128, 1]
    w2    : [64, 128]  b2: [64, 1]
    w3    : [10, 64]   b3: [10, 1]
    w4    : [10, 1]    b4: [1, 1] (SMEM scalar)
    o_ref : [1, TB]    (VMEM)   lane-dense output
    """
    x = x_ref[...]                                                     # [10, TB]

    # Layer 1: Linear(10 -> 128) + ReLU   (Dropout = identity at inference)
    h = jnp.dot(w1_ref[...], x, preferred_element_type=jnp.float32) + b1_ref[...]
    h = jnp.maximum(h, 0.0)                                            # [128, TB]

    # Layer 2: Linear(128 -> 64) + ReLU   (Dropout = identity at inference)
    h = jnp.dot(w2_ref[...], h, preferred_element_type=jnp.float32) + b2_ref[...]
    h = jnp.maximum(h, 0.0)                                            # [64, TB]

    # Layer 3: Linear(64 -> 10) + ReLU
    h = jnp.dot(w3_ref[...], h, preferred_element_type=jnp.float32) + b3_ref[...]
    h = jnp.maximum(h, 0.0)                                            # [10, TB]

    # Layer 4: Linear(10 -> 1) as VPU multiply + sublane reduction (no MXU pass)
    out = jnp.sum(h * w4_ref[...], axis=0, keepdims=True) + b4_ref[0, 0]  # [1, TB]
    o_ref[...] = out.astype(o_ref.dtype)


def dhaspi_forward(feat, params, *, tb=1024):
    """feat: [B, 10] float32.  Returns [B, 1] float32.

    params holds torch-native-layout weights (w*: [out, in]) and column biases
    (b*: [out, 1]).  Batch is zero-padded to a multiple of the (lane-dense)
    batch tile; for large batches tb=1024 gives >=2 balanced grid steps on
    v7x's dual TensorCores while staying far below VMEM limits everywhere.
    """
    B, F = feat.shape
    assert F == 10

    # Effective batch tile: multiple of 256 (lane-dense), no larger than needed.
    eff_tb = min(tb, _round_up(B, 256))
    eff_tb = max(256, _round_up(eff_tb, 256))
    B_pad = _round_up(B, eff_tb)

    # One-time layout plumbing: batch on the lane axis, zero-pad the tail.
    x_t = jnp.pad(feat.T, ((0, 0), (0, B_pad - B)))                    # [10, B_pad]

    w1, b1 = params["w1"], params["b1"]       # [128, 10], [128, 1]
    w2, b2 = params["w2"], params["b2"]       # [64, 128], [64, 1]
    w3, b3 = params["w3"], params["b3"]       # [10, 64],  [10, 1]
    w4, b4 = params["w4"], params["b4"]       # [1, 10],   [1, 1]
    w4_col = w4.T                             # [10, 1] for the broadcast reduce

    def full_spec(arr):
        # Block equals full array dims -> no (8,128) divisibility constraint.
        return pl.BlockSpec(arr.shape, lambda i: (0, 0))

    grid_spec = pltpu.PrefetchScalarGridSpec(
        num_scalar_prefetch=0,
        grid=(B_pad // eff_tb,),
        in_specs=[
            pl.BlockSpec((10, eff_tb), lambda i: (0, i)),     # transposed feat tile
            full_spec(w1), full_spec(b1),
            full_spec(w2), full_spec(b2),
            full_spec(w3), full_spec(b3),
            full_spec(w4_col),
            pl.BlockSpec(memory_space=pltpu.MemorySpace.SMEM),  # scalar bias b4
        ],
        out_specs=pl.BlockSpec((1, eff_tb), lambda i: (0, i)),  # lane-dense output
    )

    weight_bytes = 4 * sum(int(p.size) for p in
                           (w1, b1, w2, b2, w3, b3, w4, b4))
    cost = pl.CostEstimate(
        flops=2 * B_pad * (10 * 128 + 128 * 64 + 64 * 10 + 10),
        transcendentals=0,
        bytes_accessed=4 * B_pad * (10 + 1) + weight_bytes,
    )

    out_t = pl.pallas_call(
        dhaspi_kernel,
        out_shape=jax.ShapeDtypeStruct((1, B_pad), jnp.float32),
        grid_spec=grid_spec,
        compiler_params=pltpu.CompilerParams(
            dimension_semantics=("parallel",)),
        cost_estimate=cost,
    )(x_t, w1, b1, w2, b2, w3, b3, w4_col, b4)

    return out_t[:, :B].T                                              # [B, 1]


def init_params(key):
    """Deterministic synthetic parameters, PyTorch-Linear-like uniform init.

    Weights stored torch-native as [out_features, in_features];
    biases stored as [out_features, 1].
    """
    dims = [(128, 10), (64, 128), (10, 64), (1, 10)]   # (out, in)
    params = {}
    keys = jax.random.split(key, 2 * len(dims))
    for li, (fout, fin) in enumerate(dims):
        bound = 1.0 / (fin ** 0.5)
        wk, bk = keys[2 * li], keys[2 * li + 1]
        params[f"w{li + 1}"] = jax.random.uniform(
            wk, (fout, fin), jnp.float32, minval=-bound, maxval=bound)
        params[f"b{li + 1}"] = jax.random.uniform(
            bk, (fout, 1), jnp.float32, minval=-bound, maxval=bound)
    return params


def dhaspi_reference(feat, params):
    """Pure-JAX reference of the same forward pass (inference mode)."""
    h = jnp.maximum(feat @ params["w1"].T + params["b1"][:, 0], 0.0)
    h = jnp.maximum(h @ params["w2"].T + params["b2"][:, 0], 0.0)
    h = jnp.maximum(h @ params["w3"].T + params["b3"][:, 0], 0.0)
    return h @ params["w4"].T + params["b4"][:, 0]


if __name__ == "__main__":
    key = jax.random.PRNGKey(0)
    pkey, xkey = jax.random.split(key)

    params = init_params(pkey)
    feat = jax.random.normal(xkey, (16, 10), dtype=jnp.float32)  # batch=16, 10 HASPI features

    out = dhaspi_forward(feat, params)
    out = jax.block_until_ready(out)

    ref = dhaspi_reference(feat, params)
    assert out.shape == (16, 1), out.shape
    assert jnp.allclose(out, ref, atol=1e-5, rtol=1e-5), "mismatch vs reference"

    print("KERNEL_OK")
</pallas_src>

<mosaic_0001>
module attributes {stable_mosaic.version = 11 : i64} {
  func.func @dhaspi_kernel(%arg0: i32, %arg1: memref<10x256xf32, #tpu.memory_space<vmem>>, %arg2: memref<128x10xf32, #tpu.memory_space<vmem>>, %arg3: memref<128x1xf32, #tpu.memory_space<vmem>>, %arg4: memref<64x128xf32, #tpu.memory_space<vmem>>, %arg5: memref<64x1xf32, #tpu.memory_space<vmem>>, %arg6: memref<10x64xf32, #tpu.memory_space<vmem>>, %arg7: memref<10x1xf32, #tpu.memory_space<vmem>>, %arg8: memref<10x1xf32, #tpu.memory_space<vmem>>, %arg9: memref<1x1xf32, #tpu.memory_space<smem>>, %arg10: memref<1x256xf32, #tpu.memory_space<vmem>>) attributes {dimension_semantics = [#tpu.dimension_semantics<parallel>], iteration_bounds = array<i64: 1>, scalar_prefetch = 0 : i64, scratch_operands = 0 : i64, tpu.core_type = #tpu.core_type<tc>, window_params = [{transform_indices = @transform_0, window_bounds = array<i64: 10, 256>}, {pipeline_mode = #tpu.pipeline_mode<synchronous>, transform_indices = @transform_1, window_bounds = array<i64: 128, 10>}, {pipeline_mode = #tpu.pipeline_mode<synchronous>, transform_indices = @transform_2, window_bounds = array<i64: 128, 1>}, {pipeline_mode = #tpu.pipeline_mode<synchronous>, transform_indices = @transform_3, window_bounds = array<i64: 64, 128>}, {pipeline_mode = #tpu.pipeline_mode<synchronous>, transform_indices = @transform_4, window_bounds = array<i64: 64, 1>}, {pipeline_mode = #tpu.pipeline_mode<synchronous>, transform_indices = @transform_5, window_bounds = array<i64: 10, 64>}, {pipeline_mode = #tpu.pipeline_mode<synchronous>, transform_indices = @transform_6, window_bounds = array<i64: 10, 1>}, {pipeline_mode = #tpu.pipeline_mode<synchronous>, transform_indices = @transform_7, window_bounds = array<i64: 10, 1>}, {transform_indices = @transform_8, window_bounds = array<i64: 1, 1>}, {transform_indices = @transform_9, window_bounds = array<i64: 1, 256>}]} {
    %c0 = arith.constant 0 : index
    %c0_0 = arith.constant 0 : index
    %0 = vector.load %arg1[%c0, %c0_0] : memref<10x256xf32, #tpu.memory_space<vmem>>, vector<10x256xf32>
    %c0_1 = arith.constant 0 : index
    %c0_2 = arith.constant 0 : index
    %1 = vector.load %arg2[%c0_1, %c0_2] : memref<128x10xf32, #tpu.memory_space<vmem>>, vector<128x10xf32>
    %cst = arith.constant dense<0.000000e+00> : vector<128x256xf32>
    %2 = tpu.matmul %1, %0, %cst {dimension_numbers = #tpu.dot_dimension_numbers<[1], [0], [0], [1], [0, 0, 1, 1], [], []>} : vector<128x10xf32>, vector<10x256xf32>, vector<128x256xf32> -> vector<128x256xf32>
    %c0_3 = arith.constant 0 : index
    %c0_4 = arith.constant 0 : index
    %3 = vector.load %arg3[%c0_3, %c0_4] : memref<128x1xf32, #tpu.memory_space<vmem>>, vector<128x1xf32>
    %4 = vector.broadcast %3 : vector<128x1xf32> to vector<128x256xf32>
    %5 = arith.addf %2, %4 : vector<128x256xf32>
    %cst_5 = arith.constant 0.000000e+00 : f32
    %6 = vector.broadcast %cst_5 : f32 to vector<128x256xf32>
    %7 = arith.maximumf %5, %6 : vector<128x256xf32>
    %c0_6 = arith.constant 0 : index
    %c0_7 = arith.constant 0 : index
    %8 = vector.load %arg4[%c0_6, %c0_7] : memref<64x128xf32, #tpu.memory_space<vmem>>, vector<64x128xf32>
    %cst_8 = arith.constant dense<0.000000e+00> : vector<64x256xf32>
    %9 = tpu.matmul %8, %7, %cst_8 {dimension_numbers = #tpu.dot_dimension_numbers<[1], [0], [0], [1], [0, 0, 1, 1], [], []>} : vector<64x128xf32>, vector<128x256xf32>, vector<64x256xf32> -> vector<64x256xf32>
    %c0_9 = arith.constant 0 : index
    %c0_10 = arith.constant 0 : index
    %10 = vector.load %arg5[%c0_9, %c0_10] : memref<64x1xf32, #tpu.memory_space<vmem>>, vector<64x1xf32>
    %11 = vector.broadcast %10 : vector<64x1xf32> to vector<64x256xf32>
    %12 = arith.addf %9, %11 : vector<64x256xf32>
    %cst_11 = arith.constant 0.000000e+00 : f32
    %13 = vector.broadcast %cst_11 : f32 to vector<64x256xf32>
    %14 = arith.maximumf %12, %13 : vector<64x256xf32>
    %c0_12 = arith.constant 0 : index
    %c0_13 = arith.constant 0 : index
    %15 = vector.load %arg6[%c0_12, %c0_13] : memref<10x64xf32, #tpu.memory_space<vmem>>, vector<10x64xf32>
    %cst_14 = arith.constant dense<0.000000e+00> : vector<10x256xf32>
    %16 = tpu.matmul %15, %14, %cst_14 {dimension_numbers = #tpu.dot_dimension_numbers<[1], [0], [0], [1], [0, 0, 1, 1], [], []>} : vector<10x64xf32>, vector<64x256xf32>, vector<10x256xf32> -> vector<10x256xf32>
    %c0_15 = arith.constant 0 : index
    %c0_16 = arith.constant 0 : index
    %17 = vector.load %arg7[%c0_15, %c0_16] : memref<10x1xf32, #tpu.memory_space<vmem>>, vector<10x1xf32>
    %18 = vector.broadcast %17 : vector<10x1xf32> to vector<10x256xf32>
    %19 = arith.addf %16, %18 : vector<10x256xf32>
    %cst_17 = arith.constant 0.000000e+00 : f32
    %20 = vector.broadcast %cst_17 : f32 to vector<10x256xf32>
    %21 = arith.maximumf %19, %20 : vector<10x256xf32>
    %c0_18 = arith.constant 0 : index
    %c0_19 = arith.constant 0 : index
    %22 = vector.load %arg8[%c0_18, %c0_19] : memref<10x1xf32, #tpu.memory_space<vmem>>, vector<10x1xf32>
    %23 = vector.broadcast %22 : vector<10x1xf32> to vector<10x256xf32>
    %24 = arith.mulf %21, %23 : vector<10x256xf32>
    %cst_20 = arith.constant dense<0.000000e+00> : vector<256xf32>
    %25 = vector.multi_reduction <add>, %24, %cst_20 [0] : vector<10x256xf32> to vector<256xf32>
    %26 = vector.shape_cast %25 : vector<256xf32> to vector<1x256xf32>
    %c0_21 = arith.constant 0 : index
    %c0_22 = arith.constant 0 : index
    %27 = memref.load %arg9[%c0_21, %c0_22] : memref<1x1xf32, #tpu.memory_space<smem>>
    %28 = vector.broadcast %27 : f32 to vector<1x256xf32>
    %29 = arith.addf %26, %28 : vector<1x256xf32>
    %c0_23 = arith.constant 0 : index
    %c0_24 = arith.constant 0 : index
    %30 = vector.load %arg10[%c0_23, %c0_24] : memref<1x256xf32, #tpu.memory_space<vmem>>, vector<1x256xf32>
    tpu.vector_store %arg10[%c0_23, %c0_24], %29 {strides = array<i32>} : memref<1x256xf32, #tpu.memory_space<vmem>>, vector<1x256xf32>,
    return
  }
  func.func @transform_0(%arg0: i32) -> (i32, i32) {
    %c0_i32 = arith.constant 0 : i32
    %c0_i32_0 = arith.constant 0 : i32
    return %c0_i32, %arg0 : i32, i32
  }
  func.func @transform_1(%arg0: i32) -> (i32, i32) {
    %c0_i32 = arith.constant 0 : i32
    %c0_i32_0 = arith.constant 0 : i32
    %c0_i32_1 = arith.constant 0 : i32
    return %c0_i32, %c0_i32_0 : i32, i32
  }
  func.func @transform_2(%arg0: i32) -> (i32, i32) {
    %c0_i32 = arith.constant 0 : i32
    %c0_i32_0 = arith.constant 0 : i32
    %c0_i32_1 = arith.constant 0 : i32
    return %c0_i32, %c0_i32_0 : i32, i32
  }
  func.func @transform_3(%arg0: i32) -> (i32, i32) {
    %c0_i32 = arith.constant 0 : i32
    %c0_i32_0 = arith.constant 0 : i32
    %c0_i32_1 = arith.constant 0 : i32
    return %c0_i32, %c0_i32_0 : i32, i32
  }
  func.func @transform_4(%arg0: i32) -> (i32, i32) {
    %c0_i32 = arith.constant 0 : i32
    %c0_i32_0 = arith.constant 0 : i32
    %c0_i32_1 = arith.constant 0 : i32
    return %c0_i32, %c0_i32_0 : i32, i32
  }
  func.func @transform_5(%arg0: i32) -> (i32, i32) {
    %c0_i32 = arith.constant 0 : i32
    %c0_i32_0 = arith.constant 0 : i32
    %c0_i32_1 = arith.constant 0 : i32
    return %c0_i32, %c0_i32_0 : i32, i32
  }
  func.func @transform_6(%arg0: i32) -> (i32, i32) {
    %c0_i32 = arith.constant 0 : i32
    %c0_i32_0 = arith.constant 0 : i32
    %c0_i32_1 = arith.constant 0 : i32
    return %c0_i32, %c0_i32_0 : i32, i32
  }
  func.func @transform_7(%arg0: i32) -> (i32, i32) {
    %c0_i32 = arith.constant 0 : i32
    %c0_i32_0 = arith.constant 0 : i32
    %c0_i32_1 = arith.constant 0 : i32
    return %c0_i32, %c0_i32_0 : i32, i32
  }
  func.func @transform_8(%arg0: i32) -> (i32, i32) {
    %c0_i32 = arith.constant 0 : i32
    %c0_i32_0 = arith.constant 0 : i32
    %c0_i32_1 = arith.constant 0 : i32
    return %c0_i32, %c0_i32_0 : i32, i32
  }
  func.func @transform_9(%arg0: i32) -> (i32, i32) {
    %c0_i32 = arith.constant 0 : i32
    %c0_i32_0 = arith.constant 0 : i32
    return %c0_i32, %arg0 : i32, i32
  }
}

</mosaic_0001>

<bundles_post_ra>
// kernel: tpu_custom_call.1
= control target key start
LH: loop header
LB: loop body
LE: loop exit
PB: predicated region body
PF: predicated region fallthrough
CT: control target
= control target key end

     0   :  { %vm199_vm0 = vcmask 1041408   ;;  %vm864_vm1 = vmmov 1   ;;  %v865_v6 = vmov 0.0   ;;  %v866_v7 = vmov 0   ;;  %s1153_s0 = inlined_call_operand.vmem [shape: f32[10,256], index: 0, kind: input, shape index: {}]   ;;  %s1154_s1 = inlined_call_operand.vmem [shape: f32[128,10], index: 1, kind: input, shape index: {}]   ;;  %s1155_s2 = inlined_call_operand.vmem [shape: f32[128,1], index: 2, kind: input, shape index: {}]   ;;  %s1156_s3 = inlined_call_operand.vmem [shape: f32[64,128], index: 3, kind: input, shape index: {}]   ;;  %s1157_s4 = inlined_call_operand.vmem [shape: f32[64,1], index: 4, kind: input, shape index: {}]   ;;  %s1158_s5 = inlined_call_operand.vmem [shape: f32[10,64], index: 5, kind: input, shape index: {}]   ;;  %s1159_s6 = inlined_call_operand.vmem [shape: f32[10,1], index: 6, kind: input, shape index: {}]   ;;  %s1160_s7 = inlined_call_operand.vmem [shape: f32[10,1], index: 7, kind: input, shape index: {}]   ;;  %s1161_s8 = inlined_call_operand.<no memory space> [shape: f32[1,1], index: 8, kind: input, shape index: {}]   ;;  %s1162_s9 = inlined_call_operand.hbm [shape: f32[1,256], index: 9, kind: output, shape index: {}]  }
   0x1   :  { %v35_v0 = vld [vmem:[%s1153_s0 + $0x8] sm:$0xff]  ;;  %v37_v1 = vld [vmem:[%s1153_s0 + $0x18] sm:$0x3]  ;;  %v34_v2 = vld [vmem:[%s1153_s0] sm:$0xff]  ;;  %270 = vmatprep.mubr.f32.mxu0 %v865_v6  ;;  %838 = vset.pattern.permute.xlu0 %v866_v7  ;;  %vm150_vm3 = vcmask 80896  }
   0x2   :  { %v779_v3 = vpack.c.bf16 %v37_v1, %v35_v0  ;;  %vm780_vm2 = vmpackc.low %vm199_vm0, %vm864_vm1  ;;  %v36_v4 = vld [vmem:[%s1153_s0 + $0x10] sm:$0x3]  ;;  %839 = vset.pattern.permute.xlu1 %v866_v7  ;;  %v38_v8 = vld [vmem:[%s1154_s1] sm:$0xff]  ;;  %519 = vmatprep.mubr.f32.mxu1 %v865_v6 }
   0x3   :  { %v782_v5 = vpack.c.bf16 %v36_v4, %v34_v2  ;;  %v54_v9 = vld [vmem:[%s1155_s2] sm:$0xff]  ;;  %v56_v10 = vld [vmem:[%s1155_s2 + $0x10] sm:$0xff]  ;;  %v39_v11 = vld [vmem:[%s1154_s1 + $0x8] sm:$0xff] }
   0x4   :  { %781 = vmatprep.subr.msk.bf16.mxu0 %vm780_vm2, %v779_v3  ;;  %72 = vperm.xlu0 %838, %v54_v9   ;;  %v55_v12 = vld [vmem:[%s1155_s2 + $0x8] sm:$0xff]  ;;  %v57_v13 = vld [vmem:[%s1155_s2 + $0x18] sm:$0xff]  ;;  %v40_v14 = vld [vmem:[%s1154_s1 + $0x10] sm:$0xff] }
   0x5   :  { %784 = vmatpush1.bf16.msk.msra.mxu0 %vm780_vm2, %v782_v5  ;;  %82 = vperm.xlu1 %839, %v56_v10   ;;  %v58_v15 = vld [vmem:[%s1155_s2 + $0x20] sm:$0xff]  ;;  %v59_v16 = vld [vmem:[%s1155_s2 + $0x28] sm:$0xff]  ;;  %v41_v17 = vld [vmem:[%s1154_s1 + $0x18] sm:$0xff] }
   0x8   :  { %761 = vmatmul.mubr.msk.f32.vlgmr.msra.gmra.mrb[0].mxu0 %vm150_vm3, %v38_v8  ;;  %77 = vperm.xlu0 %838, %v55_v12  }
   0x9   :  { %276 = vmatprep.mubr.f32.mxu0 %v865_v6  ;;  %87 = vperm.xlu1 %839, %v57_v13  }
   0xc   :  { %762 = vmatmul.mubr.msk.f32.gmra.mrb[2].mxu0 %vm150_vm3, %v39_v11  ;;  %92 = vperm.xlu0 %838, %v58_v15  }
   0xd   :  { %282 = vmatprep.mubr.f32.mxu0 %v865_v6 }
  0x10   :  { %763 = vmatmul.mubr.msk.f32.gmra.mrb[4].mxu0 %vm150_vm3, %v40_v14 }
  0x11   :  { %288 = vmatprep.mubr.f32.mxu0 %v865_v6 }
  0x12   :  { %15 = vsyncpa [#allocation4], 0  ;;  %97 = vperm.xlu1 %839, %v59_v16   ;;  %v60_v18 = vld [vmem:[%s1155_s2 + $0x30] sm:$0xff]  ;;  %v61_v19 = vld [vmem:[%s1155_s2 + $0x38] sm:$0xff]  ;;  %vm598_vm4 = vcmask 523264   ;;  %s868_s28 = smov [#allocation3]  }
  0x13   :  { %v42_v20 = vld [vmem:[%s1154_s1 + $0x20] sm:$0xff]  ;;  %102 = vperm.xlu0 %838, %v60_v18   ;;  %v63_v22 = vld [vmem:[%s1155_s2 + $0x48] sm:$0xff]  ;;  %v64_v24 = vld [vmem:[%s1155_s2 + $0x50] sm:$0xff]  ;;  %s751_s29 = sshll.u32 %s868_s28, 4  ;;  %s752_s29 = int_to_ptr.vmem [resolvable:$true] %s751_s29 }
  0x14   :  { %764 = vmatmul.mubr.msk.f32.gmra.mrb[6].mxu0 %vm150_vm3, %v41_v17  ;;  %v62_v21 = vld [vmem:[%s1155_s2 + $0x40] sm:$0xff]  ;;  %v43_v23 = vld [vmem:[%s1154_s1 + $0x28] sm:$0xff]  ;;  %v65_v25 = vld [vmem:[%s1155_s2 + $0x58] sm:$0xff]  ;;  %s840_s30 = scalar_lea.vmem %s752_s29, 32  ;;  %p845_p1 = scmp.lt.s32.totalorder %s752_s29, %s752_s29 }
  0x15   :  { %294 = vmatprep.mubr.f32.mxu0 %v865_v6  ;;  %v44_v26 = vld [vmem:[%s1154_s1 + $0x30] sm:$0xff]  ;;  %v66_v27 = vld [vmem:[%s1155_s2 + $0x60] sm:$0xff]  ;;  %v67_v28 = vld [vmem:[%s1155_s2 + $0x68] sm:$0xff]  ;;  %p841_p0 = scmp.ne.s32.totalorder %s752_s29, %s840_s30  ;;  %p846_p2 = scmp.lt.s32.totalorder %s840_s30, %s840_s30 }
  0x16   :  { %107 = vperm.xlu1 %839, %v61_v19   ;;  %v45_v29 = vld [vmem:[%s1154_s1 + $0x38] sm:$0xff]  ;;  %v68_v30 = vld [vmem:[%s1155_s2 + $0x70] sm:$0xff]  ;;  %v46_v32 = vld [vmem:[%s1154_s1 + $0x40] sm:$0xff] }
  0x17   :  { %112 = vperm.xlu0 %838, %v62_v21   ;;  %v69_v31 = vld [vmem:[%s1155_s2 + $0x78] sm:$0xff]  ;;  %v407_v33 = vld [vmem:[%s1157_s4] sm:$0xff]  ;;  %v408_v34 = vld [vmem:[%s1157_s4 + $0x8] sm:$0xff]  ;;  %p847_p3 = por %p846_p2, %p845_p1 }
  0x18   :  { %765 = vmatmul.mubr.msk.f32.gmra.mrb[8].mxu0 %vm150_vm3, %v42_v20  ;;  %v47_v35 = vld [vmem:[%s1154_s1 + $0x48] sm:$0xff]  ;;  %v409_v36 = vld [vmem:[%s1157_s4 + $0x10] sm:$0xff]  ;;  %v410_v37 = vld [vmem:[%s1157_s4 + $0x18] sm:$0xff] }
  0x19   :  { %300 = vmatprep.mubr.f32.mxu0 %v865_v6  ;;  %v48_v38 = vld [vmem:[%s1154_s1 + $0x50] sm:$0xff]  ;;  %v411_v39 = vld [vmem:[%s1157_s4 + $0x20] sm:$0xff]  ;;  %v412_v40 = vld [vmem:[%s1157_s4 + $0x28] sm:$0xff]  ;;  %p848_p4 = pnand %p847_p3, %p841_p0 }
  0x1a   :  { %117 = vperm.xlu1 %839, %v63_v22   ;;  %v49_v41 = vld [vmem:[%s1154_s1 + $0x58] sm:$0xff]  ;;  %v413_v42 = vld [vmem:[%s1157_s4 + $0x30] sm:$0xff]  ;;  %v50_v44 = vld [vmem:[%s1154_s1 + $0x60] sm:$0xff] }
  0x1b   :  { %122 = vperm.xlu0 %838, %v64_v24   ;;  %v414_v43 = vld [vmem:[%s1157_s4 + $0x38] sm:$0xff]  ;;  %v587_v45 = vld [vmem:[%s1159_s6 + $0x8] sm:$0x3]  ;;  %v586_v46 = vld [vmem:[%s1159_s6] sm:$0xff] }
  0x1c   :  { %766 = vmatmul.mubr.msk.f32.gmra.mrb[10].mxu0 %vm150_vm3, %v43_v23  ;;  %v51_v47 = vld [vmem:[%s1154_s1 + $0x68] sm:$0xff]  ;;  %v686_v49 = vld [vmem:[%s1160_s7] sm:$0xff]  ;;  %v52_v50 = vld [vmem:[%s1154_s1 + $0x70] sm:$0xff] }
  0x1d   :  { %306 = vmatprep.mubr.f32.mxu0 %v865_v6  ;;  %v687_v48 = vld [vmem:[%s1160_s7 + $0x8] sm:$0x3]  ;;  %v53_v51 = vld [vmem:[%s1154_s1 + $0x78] sm:$0xff] }
  0x1e   :  { %127 = vperm.xlu1 %839, %v65_v25  }
  0x1f   :  { %132 = vperm.xlu0 %838, %v66_v27  }
  0x20   :  { %767 = vmatmul.mubr.msk.f32.gmra.mrb[12].mxu0 %vm150_vm3, %v44_v26 }
  0x21   :  { %312 = vmatprep.mubr.f32.mxu0 %v865_v6 }
  0x22   :  { %137 = vperm.xlu1 %839, %v67_v28  }
  0x23   :  { %142 = vperm.xlu0 %838, %v68_v30  }
  0x24   :  { %768 = vmatmul.mubr.msk.f32.gmra.mrb[14].mxu0 %vm150_vm3, %v45_v29 }
  0x25   :  { %318 = vmatprep.mubr.f32.mxu0 %v865_v6 }
  0x26   :  { %147 = vperm.xlu1 %839, %v69_v31  }
  0x27   :  { %417 = vperm.xlu0 %838, %v407_v33  }
  0x28   :  { %769 = vmatmul.mubr.msk.f32.gmra.mrb[16].mxu0 %vm150_vm3, %v46_v32 }
  0x29   :  { %324 = vmatprep.mubr.f32.mxu0 %v865_v6 }
  0x2a   :  { %422 = vperm.xlu1 %839, %v408_v34  }
  0x2b   :  { %427 = vperm.xlu0 %838, %v409_v36  }
  0x2c   :  { %770 = vmatmul.mubr.msk.f32.gmra.mrb[18].mxu0 %vm150_vm3, %v47_v35 }
  0x2d   :  { %330 = vmatprep.mubr.f32.mxu0 %v865_v6 }
  0x2e   :  { %432 = vperm.xlu1 %839, %v410_v37  }
  0x2f   :  { %437 = vperm.xlu0 %838, %v411_v39  }
  0x30   :  { %771 = vmatmul.mubr.msk.f32.gmra.mrb[20].mxu0 %vm150_vm3, %v48_v38 }
  0x31   :  { %336 = vmatprep.mubr.f32.mxu0 %v865_v6 }
  0x32   :  { %442 = vperm.xlu1 %839, %v412_v40  }
  0x33   :  { %447 = vperm.xlu0 %838, %v413_v42  }
  0x34   :  { %772 = vmatmul.mubr.msk.f32.gmra.mrb[22].mxu0 %vm150_vm3, %v49_v41 }
  0x35   :  { %342 = vmatprep.mubr.f32.mxu0 %v865_v6 }
  0x36   :  { %452 = vperm.xlu1 %839, %v414_v43  }
  0x37   :  { %595 = vperm.xlu0 %838, %v587_v45  }
  0x38   :  { %773 = vmatmul.mubr.msk.f32.gmra.mrb[24].mxu0 %vm150_vm3, %v50_v44 }
  0x39   :  { %348 = vmatprep.mubr.f32.mxu0 %v865_v6 }
  0x3a   :  { %590 = vperm.xlu1 %839, %v586_v46  }
  0x3b   :  { %695 = vperm.xlu0 %838, %v687_v48  }
  0x3c   :  { %774 = vmatmul.mubr.msk.f32.gmra.mrb[26].mxu0 %vm150_vm3, %v51_v47 }
  0x3d   :  { %354 = vmatprep.mubr.f32.mxu0 %v865_v6 }
  0x3e   :  { %690 = vperm.xlu1 %839, %v686_v49  }
  0x40   :  { %775 = vmatmul.mubr.msk.f32.gmra.mrb[28].mxu0 %vm150_vm3, %v52_v50 }
  0x41   :  { %360 = vmatprep.mubr.f32.mxu0 %v865_v6 }
  0x44   :  { %776 = vmatmul.mubr.msk.f32.gmra.mrb[30].mxu0 %vm150_vm3, %v53_v51 }
  0x83   :  { %v73_v52 = vpop.permute.xlu0 %72 }
  0x84   :  { %v83_v61 = vpop.permute.xlu1 %82 }
  0x87   :  { %v78_v56 = vpop.permute.xlu0 %77 }
  0x88   :  { %v88_v9 = vpop.permute.xlu1 %87 }
  0x8b   :  { %v93_v22 = vpop.permute.xlu0 %92 }
  0x91   :  { %v98_v25 = vpop.permute.xlu1 %97 }
  0x92   :  { %v103_v38 = vpop.permute.xlu0 %102 }
  0x95   :  { %v108_v41 = vpop.permute.xlu1 %107 }
  0xdb   :  { %v272_v53 = vpop.f32.mrb[0].mxu0 }
  0xdc   :  { %v274_v54 = vpop.f32.mrb[1].mxu0  ;;  %v273_v55 = vadd.f32 %v272_v53, %v73_v52 }
  0xdd   :  { %v275_v57 = vadd.f32 %v274_v54, %v73_v52  ;;  %v113_v54 = vpop.permute.xlu0 %112 }
  0xde   :  { %v367_v63 = vmax.f32 %v273_v55, 0.0 }
  0xdf   :  { %v278_v58 = vpop.f32.mrb[2].mxu0  ;;  %v368_v1 = vmax.f32 %v275_v57, 0.0  ;;  %v118_v57 = vpop.permute.xlu1 %117 }
  0xe0   :  { %v279_v59 = vadd.f32 %v278_v58, %v78_v56  ;;  %v280_v60 = vpop.f32.mrb[3].mxu0 }
  0xe1   :  { %v281_v62 = vadd.f32 %v280_v60, %v78_v56 }
  0xe2   :  { %v369_v0 = vmax.f32 %v279_v59, 0.0 }
  0xe3   :  { %v370_v2 = vmax.f32 %v281_v62, 0.0  ;;  %v284_v3 = vpop.f32.mrb[4].mxu0 }
  0xe4   :  { %v286_v4 = vpop.f32.mrb[5].mxu0  ;;  %v787_v5 = vpack.c.bf16 %v369_v0, %v367_v63  ;;  %v285_v8 = vadd.f32 %v284_v3, %v83_v61 }
  0xe5   :  { %v785_v7 = vpack.c.bf16 %v370_v2, %v368_v1  ;;  %v287_v10 = vadd.f32 %v286_v4, %v83_v61 }
  0xe6   :  { %v371_v15 = vmax.f32 %v285_v8, 0.0 }
  0xe7   :  { %v290_v11 = vpop.f32.mrb[6].mxu0  ;;  %786 = vmatprep.subr.bf16.mxu1 %v785_v7  ;;  %v372_v17 = vmax.f32 %v287_v10, 0.0  ;;  %v123_v7 = vpop.permute.xlu0 %122 }
  0xe8   :  { %v291_v12 = vadd.f32 %v290_v11, %v88_v9  ;;  %v292_v13 = vpop.f32.mrb[7].mxu0  ;;  %788 = vmatpush1.bf16.msra.mxu1 %v787_v5  ;;  %v128_v10 = vpop.permute.xlu1 %127 }
  0xe9   :  { %v293_v14 = vadd.f32 %v292_v13, %v88_v9 }
  0xea   :  { %v373_v16 = vmax.f32 %v291_v12, 0.0 }
  0xeb   :  { %v374_v18 = vmax.f32 %v293_v14, 0.0  ;;  %v296_v19 = vpop.f32.mrb[8].mxu0 }
  0xec   :  { %v791_v20 = vpack.c.bf16 %v373_v16, %v371_v15  ;;  %v298_v21 = vpop.f32.mrb[9].mxu0  ;;  %v297_v24 = vadd.f32 %v296_v19, %v93_v22 }
  0xed   :  { %v789_v23 = vpack.c.bf16 %v374_v18, %v372_v17  ;;  %v299_v26 = vadd.f32 %v298_v21, %v93_v22 }
  0xee   :  { %v375_v31 = vmax.f32 %v297_v24, 0.0 }
  0xef   :  { %v302_v27 = vpop.f32.mrb[10].mxu0  ;;  %790 = vmatprep.subr.bf16.mxu1 %v789_v23  ;;  %v376_v33 = vmax.f32 %v299_v26, 0.0  ;;  %v133_v23 = vpop.permute.xlu0 %132 }
  0xf0   :  { %v303_v28 = vadd.f32 %v302_v27, %v98_v25  ;;  %v304_v29 = vpop.f32.mrb[11].mxu0  ;;  %792 = vmatpush1.bf16.msra.mxu1 %v791_v20  ;;  %v138_v26 = vpop.permute.xlu1 %137 }
  0xf1   :  { %v305_v30 = vadd.f32 %v304_v29, %v98_v25 }
  0xf2   :  { %v377_v32 = vmax.f32 %v303_v28, 0.0 }
  0xf3   :  { %v378_v34 = vmax.f32 %v305_v30, 0.0  ;;  %v308_v35 = vpop.f32.mrb[12].mxu0 }
  0xf4   :  { %v795_v36 = vpack.c.bf16 %v377_v32, %v375_v31  ;;  %v310_v37 = vpop.f32.mrb[13].mxu0  ;;  %v309_v40 = vadd.f32 %v308_v35, %v103_v38 }
  0xf5   :  { %v793_v39 = vpack.c.bf16 %v378_v34, %v376_v33  ;;  %v311_v42 = vadd.f32 %v310_v37, %v103_v38 }
  0xf6   :  { %v379_v47 = vmax.f32 %v309_v40, 0.0 }
  0xf7   :  { %v314_v43 = vpop.f32.mrb[14].mxu0  ;;  %794 = vmatprep.subr.bf16.mxu1 %v793_v39  ;;  %v380_v49 = vmax.f32 %v311_v42, 0.0  ;;  %v143_v39 = vpop.permute.xlu0 %142 }
  0xf8   :  { %v315_v44 = vadd.f32 %v314_v43, %v108_v41  ;;  %v316_v45 = vpop.f32.mrb[15].mxu0  ;;  %796 = vmatpush1.bf16.msra.mxu1 %v795_v36  ;;  %v148_v42 = vpop.permute.xlu1 %147 }
  0xf9   :  { %v317_v46 = vadd.f32 %v316_v45, %v108_v41 }
  0xfa   :  { %v381_v48 = vmax.f32 %v315_v44, 0.0 }
  0xfb   :  { %v382_v50 = vmax.f32 %v317_v46, 0.0  ;;  %v320_v51 = vpop.f32.mrb[16].mxu0 }
  0xfc   :  { %v799_v52 = vpack.c.bf16 %v381_v48, %v379_v47  ;;  %v322_v53 = vpop.f32.mrb[17].mxu0  ;;  %v321_v56 = vadd.f32 %v320_v51, %v113_v54 }
  0xfd   :  { %v797_v55 = vpack.c.bf16 %v382_v50, %v380_v49  ;;  %v323_v58 = vadd.f32 %v322_v53, %v113_v54  ;;  %v399_v54 = vld [vmem:[%s1156_s3] sm:$0xff] }
  0xfe   :  { %v383_v63 = vmax.f32 %v321_v56, 0.0  ;;  %v401_v56 = vld [vmem:[%s1156_s3 + $0x10] sm:$0xff] }
  0xff   :  { %v326_v59 = vpop.f32.mrb[18].mxu0  ;;  %798 = vmatprep.subr.bf16.mxu1 %v797_v55  ;;  %v384_v1 = vmax.f32 %v323_v58, 0.0  ;;  %v400_v55 = vld [vmem:[%s1156_s3 + $0x8] sm:$0xff]  ;;  %v403_v58 = vld [vmem:[%s1156_s3 + $0x20] sm:$0xff] }
 0x100   :  { %v327_v60 = vadd.f32 %v326_v59, %v118_v57  ;;  %v328_v61 = vpop.f32.mrb[19].mxu0  ;;  %800 = vmatpush1.bf16.msra.mxu1 %v799_v52  ;;  %v404_v59 = vld [vmem:[%s1156_s3 + $0x28] sm:$0xff] }
 0x101   :  { %v329_v62 = vadd.f32 %v328_v61, %v118_v57  ;;  %v402_v57 = vld [vmem:[%s1156_s3 + $0x18] sm:$0xff] }
 0x102   :  { %v385_v0 = vmax.f32 %v327_v60, 0.0  ;;  %v405_v60 = vld [vmem:[%s1156_s3 + $0x30] sm:$0xff]  ;;  %v406_v61 = vld [vmem:[%s1156_s3 + $0x38] sm:$0xff] }
 0x103   :  { %v386_v2 = vmax.f32 %v329_v62, 0.0  ;;  %v332_v3 = vpop.f32.mrb[20].mxu0 }
 0x104   :  { %v803_v4 = vpack.c.bf16 %v385_v0, %v383_v63  ;;  %v334_v5 = vpop.f32.mrb[21].mxu0  ;;  %v333_v9 = vadd.f32 %v332_v3, %v123_v7  ;;  %v418_v0 = vpop.permute.xlu0 %417 }
 0x105   :  { %v801_v8 = vpack.c.bf16 %v386_v2, %v384_v1  ;;  %v335_v11 = vadd.f32 %v334_v5, %v123_v7  ;;  %v423_v2 = vpop.permute.xlu1 %422 }
 0x106   :  { %v387_v16 = vmax.f32 %v333_v9, 0.0 }
 0x107   :  { %v338_v12 = vpop.f32.mrb[22].mxu0  ;;  %802 = vmatprep.subr.bf16.mxu1 %v801_v8  ;;  %v388_v18 = vmax.f32 %v335_v11, 0.0 }
 0x108   :  { %v339_v13 = vadd.f32 %v338_v12, %v128_v10  ;;  %v340_v14 = vpop.f32.mrb[23].mxu0  ;;  %804 = vmatpush1.bf16.msra.mxu1 %v803_v4 }
 0x109   :  { %v341_v15 = vadd.f32 %v340_v14, %v128_v10 }
 0x10a   :  { %v389_v17 = vmax.f32 %v339_v13, 0.0 }
 0x10b   :  { %v390_v19 = vmax.f32 %v341_v15, 0.0  ;;  %v344_v20 = vpop.f32.mrb[24].mxu0 }
 0x10c   :  { %v807_v21 = vpack.c.bf16 %v389_v17, %v387_v16  ;;  %v346_v22 = vpop.f32.mrb[25].mxu0  ;;  %v345_v25 = vadd.f32 %v344_v20, %v133_v23  ;;  %v428_v16 = vpop.permute.xlu0 %427 }
 0x10d   :  { %v805_v24 = vpack.c.bf16 %v390_v19, %v388_v18  ;;  %v347_v27 = vadd.f32 %v346_v22, %v133_v23  ;;  %v433_v19 = vpop.permute.xlu1 %432 }
 0x10e   :  { %v391_v32 = vmax.f32 %v345_v25, 0.0 }
 0x10f   :  { %v350_v28 = vpop.f32.mrb[26].mxu0  ;;  %806 = vmatprep.subr.bf16.mxu1 %v805_v24  ;;  %v392_v34 = vmax.f32 %v347_v27, 0.0 }
 0x110   :  { %v351_v29 = vadd.f32 %v350_v28, %v138_v26  ;;  %v352_v30 = vpop.f32.mrb[27].mxu0  ;;  %808 = vmatpush1.bf16.msra.mxu1 %v807_v21 }
 0x111   :  { %v353_v31 = vadd.f32 %v352_v30, %v138_v26 }
 0x112   :  { %v393_v33 = vmax.f32 %v351_v29, 0.0 }
 0x113   :  { %v394_v35 = vmax.f32 %v353_v31, 0.0  ;;  %v356_v36 = vpop.f32.mrb[28].mxu0 }
 0x114   :  { %v811_v37 = vpack.c.bf16 %v393_v33, %v391_v32  ;;  %v358_v38 = vpop.f32.mrb[29].mxu0  ;;  %v357_v41 = vadd.f32 %v356_v36, %v143_v39  ;;  %v438_v32 = vpop.permute.xlu0 %437 }
 0x115   :  { %v809_v40 = vpack.c.bf16 %v394_v35, %v392_v34  ;;  %v359_v43 = vadd.f32 %v358_v38, %v143_v39  ;;  %v443_v35 = vpop.permute.xlu1 %442 }
 0x116   :  { %v395_v48 = vmax.f32 %v357_v41, 0.0 }
 0x117   :  { %v362_v44 = vpop.f32.mrb[30].mxu0  ;;  %810 = vmatprep.subr.bf16.mxu1 %v809_v40  ;;  %v396_v50 = vmax.f32 %v359_v43, 0.0 }
 0x118   :  { %v363_v45 = vadd.f32 %v362_v44, %v148_v42  ;;  %v364_v46 = vpop.f32.mrb[31].mxu0  ;;  %812 = vmatpush1.bf16.msra.mxu1 %v811_v37 }
 0x119   :  { %v365_v47 = vadd.f32 %v364_v46, %v148_v42 }
 0x11a   :  { %v397_v49 = vmax.f32 %v363_v45, 0.0 }
 0x11b   :  { %v398_v51 = vmax.f32 %v365_v47, 0.0 }
 0x11c   :  { %v815_v52 = vpack.c.bf16 %v397_v49, %v395_v48  ;;  %v448_v48 = vpop.permute.xlu0 %447 }
 0x11d   :  { %v813_v53 = vpack.c.bf16 %v398_v51, %v396_v50  ;;  %v453_v51 = vpop.permute.xlu1 %452 }
 0x11f   :  { %814 = vmatprep.subr.bf16.mxu1 %v813_v53 }
 0x120   :  { %816 = vmatpush1.bf16.msra.mxu1 %v815_v52 }
 0x123   :  { %520 = vmatmul.mubr.f32.vlgmr.msra.gmra.mrb[0].mxu1 %v399_v54 }
 0x124   :  { %525 = vmatprep.mubr.f32.mxu1 %v865_v6 }
 0x127   :  { %526 = vmatmul.mubr.f32.gmra.mrb[2].mxu1 %v400_v55 }
 0x128   :  { %531 = vmatprep.mubr.f32.mxu1 %v865_v6 }
 0x12b   :  { %532 = vmatmul.mubr.f32.gmra.mrb[4].mxu1 %v401_v56 }
 0x12c   :  { %537 = vmatprep.mubr.f32.mxu1 %v865_v6 }
 0x12f   :  { %538 = vmatmul.mubr.f32.gmra.mrb[6].mxu1 %v402_v57 }
 0x130   :  { %543 = vmatprep.mubr.f32.mxu1 %v865_v6 }
 0x133   :  { %544 = vmatmul.mubr.f32.gmra.mrb[8].mxu1 %v403_v58 }
 0x134   :  { %549 = vmatprep.mubr.f32.mxu1 %v865_v6 }
 0x137   :  { %550 = vmatmul.mubr.f32.gmra.mrb[10].mxu1 %v404_v59 }
 0x138   :  { %555 = vmatprep.mubr.f32.mxu1 %v865_v6 }
 0x13b   :  { %556 = vmatmul.mubr.f32.gmra.mrb[12].mxu1 %v405_v60 }
 0x13c   :  { %561 = vmatprep.mubr.f32.mxu1 %v865_v6 }
 0x13f   :  { %562 = vmatmul.mubr.f32.gmra.mrb[14].mxu1 %v406_v61 }
 0x140   :  { %669 = vmatprep.mubr.f32.mxu1 %v865_v6 }
 0x1f6   :  { %v521_v62 = vpop.f32.mrb[0].mxu1 }
 0x1f7   :  { %v523_v63 = vpop.f32.mrb[1].mxu1  ;;  %v522_v1 = vadd.f32 %v521_v62, %v418_v0 }
 0x1f8   :  { %v524_v3 = vadd.f32 %v523_v63, %v418_v0  ;;  %v584_v63 = vld [vmem:[%s1158_s5] sm:$0xff]  ;;  %v585_v0 = vld [vmem:[%s1158_s5 + $0x8] sm:$0x3] }
 0x1f9   :  { %v568_v9 = vmax.f32 %v522_v1, 0.0 }
 0x1fa   :  { %v527_v4 = vpop.f32.mrb[2].mxu1  ;;  %v569_v11 = vmax.f32 %v524_v3, 0.0 }
 0x1fb   :  { %v528_v5 = vadd.f32 %v527_v4, %v423_v2  ;;  %v529_v7 = vpop.f32.mrb[3].mxu1  ;;  %v596_v4 = vpop.permute.xlu0 %595 }
 0x1fc   :  { %v530_v8 = vadd.f32 %v529_v7, %v423_v2  ;;  %v591_v2 = vpop.permute.xlu1 %590 }
 0x1fd   :  { %v570_v10 = vmax.f32 %v528_v5, 0.0 }
 0x1fe   :  { %v571_v12 = vmax.f32 %v530_v8, 0.0  ;;  %v533_v13 = vpop.f32.mrb[4].mxu1 }
 0x1ff   :  { %v819_v14 = vpack.c.bf16 %v570_v10, %v568_v9  ;;  %v535_v15 = vpop.f32.mrb[5].mxu1  ;;  %v534_v18 = vadd.f32 %v533_v13, %v428_v16 }
 0x200   :  { %v817_v17 = vpack.c.bf16 %v571_v12, %v569_v11  ;;  %v536_v20 = vadd.f32 %v535_v15, %v428_v16  ;;  %v696_v15 = vpop.permute.xlu0 %695  ;;  %v691_v16 = vpop.permute.xlu1 %690 }
 0x201   :  { %v572_v25 = vmax.f32 %v534_v18, 0.0 }
 0x202   :  { %v539_v21 = vpop.f32.mrb[6].mxu1  ;;  %818 = vmatprep.subr.bf16.mxu1 %v817_v17  ;;  %v573_v27 = vmax.f32 %v536_v20, 0.0 }
 0x203   :  { %v540_v22 = vadd.f32 %v539_v21, %v433_v19  ;;  %v541_v23 = vpop.f32.mrb[7].mxu1  ;;  %820 = vmatpush1.bf16.msra.mxu1 %v819_v14 }
 0x204   :  { %v542_v24 = vadd.f32 %v541_v23, %v433_v19 }
 0x205   :  { %v574_v26 = vmax.f32 %v540_v22, 0.0 }
 0x206   :  { %v575_v28 = vmax.f32 %v542_v24, 0.0  ;;  %v545_v29 = vpop.f32.mrb[8].mxu1 }
 0x207   :  { %v823_v30 = vpack.c.bf16 %v574_v26, %v572_v25  ;;  %v547_v31 = vpop.f32.mrb[9].mxu1  ;;  %v546_v34 = vadd.f32 %v545_v29, %v438_v32 }
 0x208   :  { %v821_v33 = vpack.c.bf16 %v575_v28, %v573_v27  ;;  %v548_v36 = vadd.f32 %v547_v31, %v438_v32  ;;  %v867_v31 = vmov 1966171168  }
 0x209   :  { %v576_v41 = vmax.f32 %v546_v34, 0.0  ;;  %v726_v32 = vunpack.c.l.s4 %v867_v31 }
 0x20a   :  { %v551_v37 = vpop.f32.mrb[10].mxu1  ;;  %822 = vmatprep.subr.bf16.mxu1 %v821_v33  ;;  %v577_v43 = vmax.f32 %v548_v36, 0.0  ;;  %v728_v33 = vlaneseq }
 0x20b   :  { %v552_v38 = vadd.f32 %v551_v37, %v443_v35  ;;  %v553_v39 = vpop.f32.mrb[11].mxu1  ;;  %824 = vmatpush1.bf16.msra.mxu1 %v823_v30 }
 0x20c   :  { %v554_v40 = vadd.f32 %v553_v39, %v443_v35  ;;  %v727_v39 = vunpack.c.0.s8 %v726_v32  ;;  %vm742_vm5 = vcmp.lt.s32.totalorder %v728_v33, 256 }
 0x20d   :  { %v578_v42 = vmax.f32 %v552_v38, 0.0  ;;  %v719_v38 = vstv %s1161_s8 }
 0x20e   :  { %v579_v44 = vmax.f32 %v554_v40, 0.0  ;;  %v557_v45 = vpop.f32.mrb[12].mxu1  ;;  %v729_v40 = vshrl.u32 %v728_v33, 7 }
 0x20f   :  { %v827_v46 = vpack.c.bf16 %v578_v42, %v576_v41  ;;  %v559_v47 = vpop.f32.mrb[13].mxu1  ;;  %v558_v50 = vadd.f32 %v557_v45, %v448_v48 }
 0x210   :  { %v825_v49 = vpack.c.bf16 %v579_v44, %v577_v43  ;;  %v560_v52 = vadd.f32 %v559_v47, %v448_v48  ;;  %v730_v45 = vsub.s32 %v727_v39, %v729_v40 }
 0x211   :  { %v580_v57 = vmax.f32 %v558_v50, 0.0 }
 0x212   :  { %v563_v53 = vpop.f32.mrb[14].mxu1  ;;  %826 = vmatprep.subr.bf16.mxu1 %v825_v49  ;;  %v581_v59 = vmax.f32 %v560_v52, 0.0 }
 0x213   :  { %v564_v54 = vadd.f32 %v563_v53, %v453_v51  ;;  %v565_v55 = vpop.f32.mrb[15].mxu1  ;;  %828 = vmatpush1.bf16.msra.mxu1 %v827_v46 }
 0x214   :  { %v566_v56 = vadd.f32 %v565_v55, %v453_v51 }
 0x215   :  { %v582_v58 = vmax.f32 %v564_v54, 0.0 }
 0x216   :  { %v583_v60 = vmax.f32 %v566_v56, 0.0 }
 0x217   :  { %v831_v61 = vpack.c.bf16 %v582_v58, %v580_v57 }
 0x218   :  { %v829_v62 = vpack.c.bf16 %v583_v60, %v581_v59 }
 0x21a   :  { %830 = vmatprep.subr.bf16.mxu1 %v829_v62 }
 0x21b   :  { %832 = vmatpush1.bf16.msra.mxu1 %v831_v61 }
 0x21e   :  { %777 = vmatmul.mubr.msk.f32.vlgmr.msra.gmra.mrb[16].mxu1 %vm598_vm4, %v584_v63 }
 0x21f   :  { %675 = vmatprep.mubr.f32.mxu1 %v865_v6 }
 0x222   :  { %778 = vmatmul.mubr.msk.f32.gmra.mrb[18].mxu1 %vm598_vm4, %v585_v0 }
 0x2f1   :  { %v671_v1 = vpop.f32.mrb[16].mxu1 }
 0x2f2   :  { %v673_v3 = vpop.f32.mrb[17].mxu1  ;;  %v672_v5 = vadd.f32 %v671_v1, %v591_v2 }
 0x2f3   :  { %v674_v7 = vadd.f32 %v673_v3, %v591_v2 }
 0x2f4   :  { %v682_v11 = vmax.f32 %v672_v5, 0.0 }
 0x2f5   :  { %v677_v8 = vpop.f32.mrb[18].mxu1  ;;  %v683_v13 = vmax.f32 %v674_v7, 0.0 }
 0x2f6   :  { %v678_v9 = vadd.f32 %v677_v8, %v596_v4  ;;  %v679_v10 = vpop.f32.mrb[19].mxu1  ;;  %v698_v18 = vmul.f32 %v691_v16, %v682_v11 }
 0x2f7   :  { %v680_v12 = vadd.f32 %v679_v10, %v596_v4  ;;  %v699_v20 = vmul.f32 %v691_v16, %v683_v13 }
 0x2f8   :  { %v684_v14 = vmax.f32 %v678_v9, 0.0 }
 0x2f9   :  { %v685_v6 = vmax.f32 %v680_v12, 0.0 }
 0x2fa   :  { %v700_v17 = vmul.f32 %v696_v15, %v684_v14 }
 0x2fb   :  { %v701_v19 = vmul.f32 %v696_v15, %v685_v6 }
 0x2fc   :  { %v702_v21 = vsel %vm199_vm0, %v700_v17, 0.0 }
 0x2fd   :  { %v703_v22 = vadd.f32 %v702_v21, %v698_v18  ;;  %v710_v23 = vsel %vm199_vm0, %v701_v19, 0.0 }
 0x2fe   :  { %v711_v24 = vadd.f32 %v710_v23, %v699_v20 }
 0x2ff   :  { %v704_v25 = vrot.slane %v703_v22, 4 }
 0x300   :  { %v712_v26 = vrot.slane %v711_v24, 4 }
 0x301   :  { %v705_v27 = vadd.f32 %v704_v25, %v703_v22 }
 0x302   :  { %v713_v28 = vadd.f32 %v712_v26, %v711_v24 }
 0x303   :  { %v706_v29 = vrot.slane %v705_v27, 2 }
 0x304   :  { %v714_v30 = vrot.slane %v713_v28, 2 }
 0x305   :  { %v707_v34 = vadd.f32 %v706_v29, %v705_v27 }
 0x306   :  { %v715_v35 = vadd.f32 %v714_v30, %v713_v28 }
 0x307   :  { %v708_v36 = vrot.slane %v707_v34, 1 }
 0x308   :  { %v716_v37 = vrot.slane %v715_v35, 1 }
 0x309   :  { %v709_v41 = vadd.f32 %v708_v36, %v707_v34 }
 0x30a   :  { %v717_v42 = vadd.f32 %v716_v37, %v715_v35 }
 0x30b   :  { %v720_v43 = vadd.f32 %v719_v38, %v709_v41 }
 0x30c   :  { %v721_v44 = vadd.f32 %v719_v38, %v717_v42 }
 0x30e   :  { %v724_v46 = vcombine.low %v720_v43, %v721_v44 }
 0x310   :  { %v731_v47 = vrot.slane %v724_v46, %v730_v45 }
 0x312   :  { %v738_v48 = vrot.slane %v731_v47, %v730_v45 }
 0x314   :  { %744 = vst.msk [vmem:[#allocation3] sm:$0x3] %vm742_vm5, %v738_v48 }
 0x315   :  { %851 = shalt.err (!%p848_p4)
}
 0x316   :  { %s852_s10 = scalar_lea.hbm %s1162_s9, 32 }
 0x317   :  { %p853_p5 = scmp.ne.s32.totalorder %s1162_s9, %s852_s10  ;;  %p856_p6 = scmp.lt.u32.totalorder %s852_s10, %s1162_s9 }
 0x319   :  { %p858_p7 = pnand %p856_p6, %p853_p5 }
 0x31b   :  { %861 = shalt.err (!%p858_p7)
}
 0x31c   :  { %754 = dma.vmem_to_hbm [thread:$0]  %s752_s29, 32, %s1162_s9, [#allocation4]  }
 0x31d   :  { %862 = dma.done.wait [#allocation4], 32  }
 0x31e   :  { %863 = vsyncadd [#allocation4], 4294967264 }
 0x31f   :  { %758 = vsyncpa [#allocation4], 1 }

</bundles_post_ra>
